<compile_context>
chip_gen: v7x
topology: tpu7x:2x2x1
jax: 0.10.0
libtpu: 0.0.40
codegen_flags: <defaults>
</compile_context>

<pallas_src>
import jax
import jax.numpy as jnp
from jax.experimental import pallas as pl
from jax.experimental.pallas import tpu as pltpu


_LANE = 128
_MAX_TILE = 1024  # row / K tile for large graphs


def _round_up(x, m):
    return ((x + m - 1) // m) * m


# ----------------------------------------------------------------------------
# Pallas kernel: one (row-tile, K-tile) grid step of
#     relu( A_hat @ XW + b )
# with an f32 accumulator resident across the K axis.
# ----------------------------------------------------------------------------
def _dgc_kernel(adj_ref, xw_ref, b_ref, o_ref, acc_ref):
    k = pl.program_id(1)

    @pl.when(k == 0)
    def _():
        acc_ref[...] = jnp.zeros_like(acc_ref)

    # bf16 x bf16 -> f32 on the MXU.
    acc_ref[...] += jnp.dot(adj_ref[...], xw_ref[...],
                            preferred_element_type=jnp.float32)

    @pl.when(k == pl.num_programs(1) - 1)
    def _():
        o_ref[...] = jnp.maximum(acc_ref[...] + b_ref[...], 0.0).astype(o_ref.dtype)


# ----------------------------------------------------------------------------
# Plain-JAX glue: densify edge_index into the GCN-normalized adjacency
#   A_hat = D^{-1/2} (A + I) D^{-1/2}
# (matches PyG GCNConv default: add_self_loops=True, symmetric normalization).
# NOTE: duplicate edges collapse to weight 1 (fine for simple graphs).
# ----------------------------------------------------------------------------
def gcn_norm_dense(edge_index, num_nodes):
    src = edge_index[0]
    dst = edge_index[1]
    a = jnp.zeros((num_nodes, num_nodes), jnp.float32)
    # message flows src -> dst, i.e. row = target, col = source
    a = a.at[dst, src].set(1.0)
    a = a + jnp.eye(num_nodes, dtype=jnp.float32)  # self-loops
    deg = a.sum(axis=1)
    dinv_sqrt = jnp.where(deg > 0.0, 1.0 / jnp.sqrt(deg), 0.0)
    return dinv_sqrt[:, None] * a * dinv_sqrt[None, :]


@jax.jit
def diffusion_graph_conv(x, edge_index, w1, b1, w2, b2):
    n, c_in = x.shape
    c_out = w1.shape[1]

    # Algebraic branch fusion (exact): single weight/bias pair.
    w = (w1 + w2).astype(jnp.float32)
    b = (b1 + b2).astype(jnp.float32).reshape(1, c_out)

    # GCN-normalized dense adjacency (built under jit).
    # TODO(synk): for genuinely large sparse graphs, replace the dense [N,N]
    # adjacency with a PrefetchScalarGridSpec neighbor-gather / CSR row-block
    # formulation, and cache A_hat across calls when the graph is static.
    adj = gcn_norm_dense(edge_index, n)

    # Precompute XW once (f32 matmul in XLA), cast the big streams to bf16.
    xw = x.astype(jnp.float32) @ w  # (n, c_out)

    # Lane/sublane-friendly padded shapes and tile sizes.
    c_out_p = _round_up(c_out, _LANE)
    if n <= _MAX_TILE:
        n_p = _round_up(n, _LANE)
        tm = tk = n_p  # single tile on each axis for small graphs
    else:
        tm = tk = _MAX_TILE
        n_p = _round_up(n, _MAX_TILE)

    # Zero padding is exact: padded rows are sliced away, padded K cols of
    # A_hat multiply padded (zero) rows of XW.
    adj_p = jnp.pad(adj, ((0, n_p - n), (0, n_p - n))).astype(jnp.bfloat16)
    xw_p = jnp.pad(xw, ((0, n_p - n), (0, c_out_p - c_out))).astype(jnp.bfloat16)
    b_p = jnp.pad(b, ((0, 0), (0, c_out_p - c_out)))

    out_p = pl.pallas_call(
        _dgc_kernel,
        out_shape=jax.ShapeDtypeStruct((n_p, c_out_p), jnp.float32),
        grid=(n_p // tm, n_p // tk),
        in_specs=[
            pl.BlockSpec((tm, tk), lambda i, k: (i, k)),          # A_hat tile (bf16)
            pl.BlockSpec((tk, c_out_p), lambda i, k: (k, 0)),     # XW K-slab (bf16)
            pl.BlockSpec((1, c_out_p), lambda i, k: (0, 0)),      # fused bias (f32)
        ],
        out_specs=pl.BlockSpec((tm, c_out_p), lambda i, k: (i, 0)),
        scratch_shapes=[pltpu.VMEM((tm, c_out_p), jnp.float32)],  # f32 accumulator
        compiler_params=pltpu.CompilerParams(
            # rows independent -> megacore sharding on v7x; K is the reduction.
            dimension_semantics=("parallel", "arbitrary"),
            # Actual usage is a few MiB (flat in N); 48 MiB is safe on v5e/v6e
            # (128 MiB VMEM) and stays under v7x's 64 MiB per TensorCore.
            vmem_limit_bytes=48 * 1024 * 1024,
        ),
    )(adj_p, xw_p, b_p)

    return out_p[:n, :c_out]


# ----------------------------------------------------------------------------
# Pure-JAX f32 reference (sanity check of kernel semantics).
# ----------------------------------------------------------------------------
def diffusion_graph_conv_ref(x, edge_index, w1, b1, w2, b2):
    adj = gcn_norm_dense(edge_index, x.shape[0])
    h1 = adj @ (x @ w1) + b1
    h2 = adj @ (x @ w2) + b2
    return jnp.maximum(h1 + h2, 0.0)


def _glorot(key, shape):
    fan_in, fan_out = shape
    limit = jnp.sqrt(6.0 / (fan_in + fan_out))
    return jax.random.uniform(key, shape, jnp.float32, -limit, limit)


if __name__ == "__main__":
    # Small synthetic problem consistent with the module's forward:
    #   N nodes, in_channels -> out_channels, two GCNConv branches summed.
    N, C_IN, C_OUT = 16, 8, 16

    key = jax.random.PRNGKey(0)
    kx, kw1, kw2, kb1, kb2 = jax.random.split(key, 5)

    x = jax.random.normal(kx, (N, C_IN), jnp.float32)

    # Deterministic synthetic edges (the original script's `edges` list is
    # empty, so we build a bidirectional ring graph in-script).
    src = jnp.arange(N, dtype=jnp.int32)
    dst = jnp.roll(src, -1)
    edge_index = jnp.stack(
        [jnp.concatenate([src, dst]), jnp.concatenate([dst, src])], axis=0
    )  # [2, 2N]

    # GCNConv parameters (deterministic glorot weights, small random biases).
    w1 = _glorot(kw1, (C_IN, C_OUT))
    b1 = 0.1 * jax.random.normal(kb1, (1, C_OUT), jnp.float32)
    w2 = _glorot(kw2, (C_IN, C_OUT))
    b2 = 0.1 * jax.random.normal(kb2, (1, C_OUT), jnp.float32)

    out = diffusion_graph_conv(x, edge_index, w1, b1, w2, b2)
    out = jax.block_until_ready(out)

    ref = diffusion_graph_conv_ref(x, edge_index, w1, b1, w2, b2)
    assert out.shape == (N, C_OUT)
    assert out.dtype == jnp.float32
    # bf16 streaming of A_hat / XW -> compare with bf16-level tolerance.
    assert jnp.allclose(out, ref, atol=5e-2, rtol=5e-2)

    print("KERNEL_OK")
</pallas_src>

<mosaic_0001>
module attributes {stable_mosaic.version = 11 : i64} {
  func.func @_dgc_kernel(%arg0: i32, %arg1: i32, %arg2: memref<128x128xbf16, #tpu.memory_space<vmem>>, %arg3: memref<128x128xbf16, #tpu.memory_space<vmem>>, %arg4: memref<1x128xf32, #tpu.memory_space<vmem>>, %arg5: memref<128x128xf32, #tpu.memory_space<vmem>>, %arg6: memref<128x128xf32, #tpu.memory_space<vmem>>) attributes {dimension_semantics = [#tpu.dimension_semantics<parallel>, #tpu.dimension_semantics<arbitrary>], iteration_bounds = array<i64: 1, 1>, scalar_prefetch = 0 : i64, scratch_operands = 1 : i64, tpu.core_type = #tpu.core_type<tc>, window_params = [{transform_indices = @transform_0, window_bounds = array<i64: 128, 128>}, {transform_indices = @transform_1, window_bounds = array<i64: 128, 128>}, {pipeline_mode = #tpu.pipeline_mode<synchronous>, transform_indices = @transform_2, window_bounds = array<i64: 1, 128>}, {transform_indices = @transform_3, window_bounds = array<i64: 128, 128>}]} {
    %c0_i32 = arith.constant 0 : i32
    %0 = arith.cmpi eq, %arg1, %c0_i32 : i32
    %1 = arith.extui %0 : i1 to i32
    %c0_i32_0 = arith.constant 0 : i32
    %2 = arith.cmpi ne, %1, %c0_i32_0 : i32
    scf.if %2 {
      %cst_10 = arith.constant 0.000000e+00 : f32
      %12 = vector.broadcast %cst_10 : f32 to vector<128x128xf32>
      %c0_11 = arith.constant 0 : index
      %c0_12 = arith.constant 0 : index
      %13 = vector.load %arg6[%c0_11, %c0_12] : memref<128x128xf32, #tpu.memory_space<vmem>>, vector<128x128xf32>
      tpu.vector_store %arg6[%c0_11, %c0_12], %12 {strides = array<i32>} : memref<128x128xf32, #tpu.memory_space<vmem>>, vector<128x128xf32>,
    } else {
    }
    %c0 = arith.constant 0 : index
    %c0_1 = arith.constant 0 : index
    %3 = vector.load %arg6[%c0, %c0_1] : memref<128x128xf32, #tpu.memory_space<vmem>>, vector<128x128xf32>
    %c0_2 = arith.constant 0 : index
    %c0_3 = arith.constant 0 : index
    %4 = vector.load %arg2[%c0_2, %c0_3] : memref<128x128xbf16, #tpu.memory_space<vmem>>, vector<128x128xbf16>
    %c0_4 = arith.constant 0 : index
    %c0_5 = arith.constant 0 : index
    %5 = vector.load %arg3[%c0_4, %c0_5] : memref<128x128xbf16, #tpu.memory_space<vmem>>, vector<128x128xbf16>
    %cst = arith.constant dense<0.000000e+00> : vector<128x128xf32>
    %6 = tpu.matmul %4, %5, %cst {dimension_numbers = #tpu.dot_dimension_numbers<[1], [0], [0], [1], [0, 0, 1, 1], [], []>} : vector<128x128xbf16>, vector<128x128xbf16>, vector<128x128xf32> -> vector<128x128xf32>
    %7 = arith.addf %3, %6 : vector<128x128xf32>
    %c0_6 = arith.constant 0 : index
    %c0_7 = arith.constant 0 : index
    %8 = vector.load %arg6[%c0_6, %c0_7] : memref<128x128xf32, #tpu.memory_space<vmem>>, vector<128x128xf32>
    tpu.vector_store %arg6[%c0_6, %c0_7], %7 {strides = array<i32>} : memref<128x128xf32, #tpu.memory_space<vmem>>, vector<128x128xf32>,
    %c0_i32_8 = arith.constant 0 : i32
    %9 = arith.cmpi eq, %arg1, %c0_i32_8 : i32
    %10 = arith.extui %9 : i1 to i32
    %c0_i32_9 = arith.constant 0 : i32
    %11 = arith.cmpi ne, %10, %c0_i32_9 : i32
    scf.if %11 {
      %c0_10 = arith.constant 0 : index
      %c0_11 = arith.constant 0 : index
      %12 = vector.load %arg6[%c0_10, %c0_11] : memref<128x128xf32, #tpu.memory_space<vmem>>, vector<128x128xf32>
      %c0_12 = arith.constant 0 : index
      %c0_13 = arith.constant 0 : index
      %13 = vector.load %arg4[%c0_12, %c0_13] : memref<1x128xf32, #tpu.memory_space<vmem>>, vector<1x128xf32>
      %14 = vector.broadcast %13 : vector<1x128xf32> to vector<128x128xf32>
      %15 = arith.addf %12, %14 : vector<128x128xf32>
      %cst_14 = arith.constant 0.000000e+00 : f32
      %16 = vector.broadcast %cst_14 : f32 to vector<128x128xf32>
      %17 = arith.maximumf %15, %16 : vector<128x128xf32>
      %c0_15 = arith.constant 0 : index
      %c0_16 = arith.constant 0 : index
      %18 = vector.load %arg5[%c0_15, %c0_16] : memref<128x128xf32, #tpu.memory_space<vmem>>, vector<128x128xf32>
      tpu.vector_store %arg5[%c0_15, %c0_16], %17 {strides = array<i32>} : memref<128x128xf32, #tpu.memory_space<vmem>>, vector<128x128xf32>,
    } else {
    }
    return
  }
  func.func @transform_0(%arg0: i32, %arg1: i32) -> (i32, i32) {
    %c0_i32 = arith.constant 0 : i32
    return %arg0, %arg1 : i32, i32
  }
  func.func @transform_1(%arg0: i32, %arg1: i32) -> (i32, i32) {
    %c0_i32 = arith.constant 0 : i32
    %c0_i32_0 = arith.constant 0 : i32
    return %arg1, %c0_i32 : i32, i32
  }
  func.func @transform_2(%arg0: i32, %arg1: i32) -> (i32, i32) {
    %c0_i32 = arith.constant 0 : i32
    %c0_i32_0 = arith.constant 0 : i32
    %c0_i32_1 = arith.constant 0 : i32
    return %c0_i32, %c0_i32_0 : i32, i32
  }
  func.func @transform_3(%arg0: i32, %arg1: i32) -> (i32, i32) {
    %c0_i32 = arith.constant 0 : i32
    %c0_i32_0 = arith.constant 0 : i32
    return %arg0, %c0_i32 : i32, i32
  }
}

</mosaic_0001>

<bundles_post_ra>
// kernel: diffusion_graph_conv.1
= control target key start
LH: loop header
LB: loop body
LE: loop exit
PB: predicated region body
PF: predicated region fallthrough
CT: control target
= control target key end

     0   :  { %s602_s1 = inlined_call_operand.vmem [shape: bf16[128,128], index: 1, kind: input, shape index: {}]   ;;  %s603_s0 = inlined_call_operand.vmem [shape: bf16[128,128], index: 0, kind: input, shape index: {}]   ;;  %s604_s2 = inlined_call_operand.vmem [shape: f32[1,128], index: 2, kind: input, shape index: {}]   ;;  %s605_s3 = inlined_call_operand.vmem [shape: f32[128,128], index: 3, kind: output, shape index: {}]  }
   0x1   :  { %v467_v0 = vld [vmem:[%s602_s1] sm:$0xff]   ;;  %v468_v1 = vld [vmem:[%s602_s1 + $0x8] sm:$0xff]   ;;  %v469_v2 = vld [vmem:[%s602_s1 + $0x10] sm:$0xff]  }
   0x2   :  { %419 = vmatprep.subr.bf16.mxu0 %v467_v0  ;;  %451 = vmatprep.subr.bf16.mxu1 %v467_v0  ;;  %v470_v3 = vld [vmem:[%s602_s1 + $0x18] sm:$0xff]   ;;  %v475_v4 = vld [vmem:[%s603_s0] sm:$0xff]   ;;  %v472_v7 = vld [vmem:[%s602_s1 + $0x28] sm:$0xff]  }
   0x3   :  { %420 = vmatpush3.bf16.msra.mxu0 %v467_v0  ;;  %459 = vmatpush3.bf16.msra.mxu1 %v467_v0  ;;  %v476_v5 = vld [vmem:[%s603_s0 + $0x20] sm:$0xff]   ;;  %v473_v8 = vld [vmem:[%s602_s1 + $0x30] sm:$0xff]   ;;  %v474_v9 = vld [vmem:[%s602_s1 + $0x38] sm:$0xff]  }
   0x4   :  { %421 = vmatprep.subr.bf16.mxu0 %v468_v1  ;;  %452 = vmatprep.subr.bf16.mxu1 %v468_v1  ;;  %v471_v6 = vld [vmem:[%s602_s1 + $0x20] sm:$0xff]   ;;  %v477_v10 = vld [vmem:[%s603_s0 + $0x8] sm:$0xff]   ;;  %v479_v12 = vld [vmem:[%s603_s0 + $0x10] sm:$0xff]  }
   0x5   :  { %435 = vmatprep.mubr.bf16.mxu0 %v475_v4  ;;  %443 = vmatprep.mubr.bf16.mxu1 %v476_v5  ;;  %v478_v11 = vld [vmem:[%s603_s0 + $0x28] sm:$0xff]   ;;  %v480_v13 = vld [vmem:[%s603_s0 + $0x30] sm:$0xff]   ;;  %v481_v14 = vld [vmem:[%s603_s0 + $0x18] sm:$0xff]  }
   0x6   :  { %v482_v15 = vld [vmem:[%s603_s0 + $0x38] sm:$0xff]   ;;  %v402_v16 = vld [vmem:[%s604_s2] ss:$0 sm:$0xff] }
   0x7   :  { %422 = vmatpush3.bf16.msra.mxu0 %v468_v1  ;;  %460 = vmatpush3.bf16.msra.mxu1 %v468_v1 }
   0x8   :  { %423 = vmatprep.subr.bf16.mxu0 %v469_v2  ;;  %453 = vmatprep.subr.bf16.mxu1 %v469_v2 }
   0xb   :  { %424 = vmatpush3.bf16.msra.mxu0 %v469_v2  ;;  %461 = vmatpush3.bf16.msra.mxu1 %v469_v2 }
   0xc   :  { %425 = vmatprep.subr.bf16.mxu0 %v470_v3  ;;  %454 = vmatprep.subr.bf16.mxu1 %v470_v3 }
   0xf   :  { %426 = vmatpush3.bf16.msra.mxu0 %v470_v3  ;;  %462 = vmatpush3.bf16.msra.mxu1 %v470_v3 }
  0x10   :  { %427 = vmatprep.subr.bf16.mxu0 %v471_v6  ;;  %455 = vmatprep.subr.bf16.mxu1 %v471_v6 }
  0x13   :  { %428 = vmatpush3.bf16.msra.mxu0 %v471_v6  ;;  %463 = vmatpush3.bf16.msra.mxu1 %v471_v6 }
  0x14   :  { %429 = vmatprep.subr.bf16.mxu0 %v472_v7  ;;  %456 = vmatprep.subr.bf16.mxu1 %v472_v7 }
  0x17   :  { %430 = vmatpush3.bf16.msra.mxu0 %v472_v7  ;;  %464 = vmatpush3.bf16.msra.mxu1 %v472_v7 }
  0x18   :  { %431 = vmatprep.subr.bf16.mxu0 %v473_v8  ;;  %457 = vmatprep.subr.bf16.mxu1 %v473_v8 }
  0x1b   :  { %432 = vmatpush3.bf16.msra.mxu0 %v473_v8  ;;  %465 = vmatpush3.bf16.msra.mxu1 %v473_v8 }
  0x1c   :  { %433 = vmatprep.subr.bf16.mxu0 %v474_v9  ;;  %458 = vmatprep.subr.bf16.mxu1 %v474_v9 }
  0x1f   :  { %434 = vmatpush3.bf16.msra.mxu0 %v474_v9  ;;  %466 = vmatpush3.bf16.msra.mxu1 %v474_v9 }
  0x22   :  { %436 = vmatmul.mubr.bf16.vlgmr.msra.gmra.mrb[0].mxu0 %v477_v10  ;;  %444 = vmatmul.mubr.bf16.vlgmr.msra.gmra.mrb[0].mxu1 %v478_v11 }
  0x23   :  { %439 = vmatprep.mubr.bf16.mxu0 %v479_v12  ;;  %447 = vmatprep.mubr.bf16.mxu1 %v480_v13 }
  0x2a   :  { %440 = vmatmul.mubr.bf16.gmra.mrb[4].mxu0 %v481_v14  ;;  %448 = vmatmul.mubr.bf16.gmra.mrb[4].mxu1 %v482_v15 }
  0xf5   :  { %v437_v17 = vpop.f32.mrb[0].mxu0  ;;  %v445_v18 = vpop.f32.mrb[0].mxu1 }
  0xf6   :  { %v336_v19 = vadd.f32 %v437_v17, %v402_v16  ;;  %v344_v20 = vadd.f32 %v445_v18, %v402_v16  ;;  %v213_v21 = vpop.f32.mrb[1].mxu0  ;;  %v245_v22 = vpop.f32.mrb[1].mxu1 }
  0xf7   :  { %v334_v23 = vadd.f32 %v402_v16, %v213_v21  ;;  %v342_v24 = vadd.f32 %v402_v16, %v245_v22  ;;  %v438_v25 = vpop.f32.mrb[2].mxu0  ;;  %v446_v26 = vpop.f32.mrb[2].mxu1 }
  0xf8   :  { %v352_v27 = vmax.f32 %v336_v19, 0.0  ;;  %v360_v28 = vmax.f32 %v344_v20, 0.0  ;;  %v337_v29 = vadd.f32 %v438_v25, %v402_v16  ;;  %v345_v30 = vadd.f32 %v446_v26, %v402_v16  ;;  %v216_v31 = vpop.f32.mrb[3].mxu0  ;;  %v248_v32 = vpop.f32.mrb[3].mxu1 }
  0xf9   :  { %v350_v33 = vmax.f32 %v334_v23, 0.0  ;;  %v358_v34 = vmax.f32 %v342_v24, 0.0  ;;  %v335_v35 = vadd.f32 %v402_v16, %v216_v31  ;;  %v343_v36 = vadd.f32 %v402_v16, %v248_v32 }
  0xfa   :  { %368 = vst [vmem:[%s605_s3 + $0x10] sm:$0xff] %v352_v27  ;;  %376 = vst [vmem:[%s605_s3 + $0x50] sm:$0xff] %v360_v28  ;;  %v353_v37 = vmax.f32 %v337_v29, 0.0  ;;  %v361_v38 = vmax.f32 %v345_v30, 0.0 }
  0xfb   :  { %366 = vst [vmem:[%s605_s3] sm:$0xff] %v350_v33  ;;  %374 = vst [vmem:[%s605_s3 + $0x40] sm:$0xff] %v358_v34  ;;  %v351_v39 = vmax.f32 %v335_v35, 0.0  ;;  %v359_v40 = vmax.f32 %v343_v36, 0.0 }
  0xfc   :  { %369 = vst [vmem:[%s605_s3 + $0x18] sm:$0xff] %v353_v37  ;;  %377 = vst [vmem:[%s605_s3 + $0x58] sm:$0xff] %v361_v38 }
  0xfd   :  { %367 = vst [vmem:[%s605_s3 + $0x8] sm:$0xff] %v351_v39  ;;  %375 = vst [vmem:[%s605_s3 + $0x48] sm:$0xff] %v359_v40  ;;  %v441_v41 = vpop.f32.mrb[4].mxu0  ;;  %v449_v42 = vpop.f32.mrb[4].mxu1 }
  0xfe   :  { %v340_v43 = vadd.f32 %v441_v41, %v402_v16  ;;  %v348_v44 = vadd.f32 %v449_v42, %v402_v16  ;;  %v229_v45 = vpop.f32.mrb[5].mxu0  ;;  %v261_v46 = vpop.f32.mrb[5].mxu1 }
  0xff   :  { %v338_v47 = vadd.f32 %v402_v16, %v229_v45  ;;  %v346_v48 = vadd.f32 %v402_v16, %v261_v46  ;;  %v442_v49 = vpop.f32.mrb[6].mxu0  ;;  %v450_v50 = vpop.f32.mrb[6].mxu1 }
 0x100   :  { %v356_v51 = vmax.f32 %v340_v43, 0.0  ;;  %v364_v52 = vmax.f32 %v348_v44, 0.0  ;;  %v341_v53 = vadd.f32 %v442_v49, %v402_v16  ;;  %v349_v54 = vadd.f32 %v450_v50, %v402_v16  ;;  %v232_v55 = vpop.f32.mrb[7].mxu0  ;;  %v264_v56 = vpop.f32.mrb[7].mxu1 }
 0x101   :  { %v354_v57 = vmax.f32 %v338_v47, 0.0  ;;  %v362_v58 = vmax.f32 %v346_v48, 0.0  ;;  %v339_v59 = vadd.f32 %v402_v16, %v232_v55  ;;  %v347_v60 = vadd.f32 %v402_v16, %v264_v56 }
 0x102   :  { %372 = vst [vmem:[%s605_s3 + $0x30] sm:$0xff] %v356_v51  ;;  %380 = vst [vmem:[%s605_s3 + $0x70] sm:$0xff] %v364_v52  ;;  %v357_v61 = vmax.f32 %v341_v53, 0.0  ;;  %v365_v62 = vmax.f32 %v349_v54, 0.0 }
 0x103   :  { %370 = vst [vmem:[%s605_s3 + $0x20] sm:$0xff] %v354_v57  ;;  %378 = vst [vmem:[%s605_s3 + $0x60] sm:$0xff] %v362_v58  ;;  %v355_v63 = vmax.f32 %v339_v59, 0.0  ;;  %v363_v0 = vmax.f32 %v347_v60, 0.0 }
 0x104   :  { %373 = vst [vmem:[%s605_s3 + $0x38] sm:$0xff] %v357_v61  ;;  %381 = vst [vmem:[%s605_s3 + $0x78] sm:$0xff] %v365_v62 }
 0x105   :  { %371 = vst [vmem:[%s605_s3 + $0x28] sm:$0xff] %v355_v63  ;;  %379 = vst [vmem:[%s605_s3 + $0x68] sm:$0xff] %v363_v0 }

</bundles_post_ra>
